<compile_context>
chip_gen: v7x
topology: tpu7x:2x2x1
jax: 0.10.0
libtpu: 0.0.40
codegen_flags: <defaults>
</compile_context>

<pallas_src>
import jax
import jax.numpy as jnp
from jax import lax
from jax.experimental import pallas as pl
from jax.experimental.pallas import tpu as pltpu


# Contract the last dim of lhs with the last dim of rhs (NT matmul).
_NT = (((1,), (1,)), ((), ()))


def _partial_ffn(x, w1, b1, w2):
    """relu(x @ w1^T + b1) @ w2^T for one d_ff tile, fp32 accumulation."""
    h = lax.dot_general(x, w1, _NT, preferred_element_type=jnp.float32)
    h = jnp.maximum(h + b1.astype(jnp.float32), 0.0)
    # (dropout would act on `h` here; identity in eval mode)
    return lax.dot_general(h.astype(w2.dtype), w2, _NT,
                           preferred_element_type=jnp.float32)


def _ffn_kernel_single(x_ref, w1_ref, b1_ref, w2_ref, b2_ref, o_ref):
    """grid_ff == 1: whole d_ff in one shot, no scratch."""
    out = _partial_ffn(x_ref[...], w1_ref[...], b1_ref[...], w2_ref[...])
    o_ref[...] = (out + b2_ref[...].astype(jnp.float32)).astype(o_ref.dtype)


def _ffn_kernel_acc_out(x_ref, w1_ref, b1_ref, w2_ref, b2_ref, o_ref):
    """grid_ff > 1, f32 output: accumulate directly into o_ref (no scratch)."""
    j = pl.program_id(1)
    contrib = _partial_ffn(x_ref[...], w1_ref[...], b1_ref[...], w2_ref[...])

    @pl.when(j == 0)
    def _():
        o_ref[...] = contrib

    @pl.when(j > 0)
    def _():
        o_ref[...] += contrib

    @pl.when(j == pl.num_programs(1) - 1)
    def _():
        o_ref[...] += b2_ref[...]


def _ffn_kernel_scratch(x_ref, w1_ref, b1_ref, w2_ref, b2_ref, o_ref, acc_ref):
    """grid_ff > 1, non-f32 output: fp32 VMEM accumulator."""
    j = pl.program_id(1)
    contrib = _partial_ffn(x_ref[...], w1_ref[...], b1_ref[...], w2_ref[...])

    @pl.when(j == 0)
    def _():
        acc_ref[...] = contrib

    @pl.when(j > 0)
    def _():
        acc_ref[...] += contrib

    @pl.when(j == pl.num_programs(1) - 1)
    def _():
        o_ref[...] = (acc_ref[...]
                      + b2_ref[...].astype(jnp.float32)).astype(o_ref.dtype)


def _round_up(v, m):
    return ((v + m - 1) // m) * m


def _vmem_budget_bytes():
    """(physical VMEM capacity, usable tile budget) for the current TPU gen."""
    try:
        cap = int(pltpu.get_tpu_info().vmem_capacity_bytes)
    except Exception:
        cap = 64 * 1024 * 1024          # conservative (v7x-sized) fallback
    budget = min(int(0.70 * cap), cap - 16 * 1024 * 1024)
    budget = max(budget, 24 * 1024 * 1024)
    return cap, budget


def _choose_tiles(n_rows, d_model, d_ff, x_bytes, w_bytes, out_bytes,
                  budget, tile_rows, tile_ff):
    """VMEM-aware (row, d_ff) tile selection."""
    # Per-row VMEM cost: x + out double-buffered, fp32 accumulator worst case.
    per_row = d_model * (2 * x_bytes + 2 * out_bytes + 4)

    def fixed_bytes(tf):    # double-buffered W1/b1/W2/b2 tiles
        return 2 * (tf * d_model * w_bytes + tf * 4
                    + d_model * tf * w_bytes + d_model * 4)

    if tile_ff is None:
        if d_ff % 128 == 0:
            cands = sorted({c for c in (d_ff, 8192, 4096, 2048, 1024, 512, 256, 128)
                            if c <= d_ff and d_ff % c == 0}, reverse=True)
        else:
            cands = [d_ff]               # lane dims must be *128 unless full extent
        target_rows = min(512, _round_up(n_rows, 8))
        chosen = None
        # Largest tile_ff whose weight tiles leave room for a big row tile.
        for cand in cands:
            fb = fixed_bytes(cand)
            if fb <= budget // 2 and (budget - fb) // per_row >= target_rows:
                chosen = cand
                break
        if chosen is None:               # else: largest that fits half the budget
            for cand in cands:
                if fixed_bytes(cand) <= budget // 2:
                    chosen = cand
                    break
        if chosen is None:
            chosen = cands[-1]
        tile_ff = chosen
    assert d_ff % tile_ff == 0, "tile_ff must divide d_ff"

    if tile_rows is None:
        avail = max(budget - fixed_bytes(tile_ff), 8 * per_row)
        tile_rows = max(8, (avail // per_row) // 8 * 8)   # no artificial cap

    if tile_rows >= n_rows:
        tile_rows = n_rows                       # single full-extent row block
    # v7x has 2 TensorCores: keep >= 2 row blocks so the "parallel" axis splits.
    if n_rows >= 16:
        tile_rows = min(tile_rows, max(8, _round_up(pl.cdiv(n_rows, 2), 8)))
    if tile_rows < n_rows:
        tile_rows = max(8, (tile_rows // 8) * 8)  # sublane-aligned partial block
    return tile_rows, tile_ff


def feed_forward_block(x, w1, b1, w2, b2, *, compute_dtype=None,
                       tile_rows=None, tile_ff=None):
    """Fused FeedForwardBlock forward via a Pallas TPU kernel.

    x  : (..., d_model)
    w1 : (d_ff, d_model)   == torch nn.Linear(d_model, d_ff).weight
    b1 : (d_ff,)
    w2 : (d_model, d_ff)   == torch nn.Linear(d_ff, d_model).weight
    b2 : (d_model,)
    compute_dtype: optional (e.g. jnp.bfloat16) matmul-input dtype; fp32
                   accumulation is always used.  For production, store the
                   weights pre-cast so the cast is hoisted out of the hot path.
    """
    orig_shape = x.shape
    d_model = orig_shape[-1]
    d_ff, d_model_w = w1.shape
    assert d_model_w == d_model and w2.shape == (d_model, d_ff)

    out_dtype = x.dtype
    if compute_dtype is not None:
        x = x.astype(compute_dtype)
        w1 = w1.astype(compute_dtype)
        w2 = w2.astype(compute_dtype)

    x2d = x.reshape(-1, d_model)
    n_rows = x2d.shape[0]
    b1r = b1.reshape(1, d_ff).astype(jnp.float32)
    b2r = b2.reshape(1, d_model).astype(jnp.float32)

    x_bytes = jnp.dtype(x2d.dtype).itemsize
    w_bytes = jnp.dtype(w1.dtype).itemsize
    out_bytes = jnp.dtype(out_dtype).itemsize

    cap, budget = _vmem_budget_bytes()
    tile_rows, tile_ff = _choose_tiles(n_rows, d_model, d_ff, x_bytes, w_bytes,
                                       out_bytes, budget, tile_rows, tile_ff)
    grid_ff = d_ff // tile_ff
    use_scratch = (grid_ff > 1) and (out_dtype != jnp.float32)

    def est_bytes(tr, tf):
        return (2 * tr * d_model * x_bytes                       # x
                + 2 * (tf * d_model * w_bytes + tf * 4)          # W1, b1
                + 2 * (d_model * tf * w_bytes + d_model * 4)     # W2, b2
                + 2 * tr * d_model * out_bytes                   # out
                + (tr * d_model * 4 if use_scratch else 0))      # acc scratch

    # Safety valve: if explicitly requested tiles overshoot VMEM, shrink rows.
    while est_bytes(tile_rows, tile_ff) > budget and tile_rows > 8:
        tile_rows = max(8, (tile_rows // 2) // 8 * 8)
    grid_rows = pl.cdiv(n_rows, tile_rows)

    vmem_limit = int(min(cap - 8 * 1024 * 1024,
                         max(32 * 1024 * 1024,
                             est_bytes(tile_rows, tile_ff) + 8 * 1024 * 1024)))

    if grid_ff == 1:
        grid = (grid_rows,)
        in_specs = [
            pl.BlockSpec((tile_rows, d_model), lambda i: (i, 0)),   # x rows
            pl.BlockSpec((d_ff, d_model), lambda i: (0, 0)),        # W1 (full)
            pl.BlockSpec((1, d_ff), lambda i: (0, 0)),              # b1
            pl.BlockSpec((d_model, d_ff), lambda i: (0, 0)),        # W2 (full)
            pl.BlockSpec((1, d_model), lambda i: (0, 0)),           # b2
        ]
        out_specs = pl.BlockSpec((tile_rows, d_model), lambda i: (i, 0))
        scratch_shapes = []
        kernel = _ffn_kernel_single
        dim_sem = ("parallel",)
    else:
        grid = (grid_rows, grid_ff)
        in_specs = [
            pl.BlockSpec((tile_rows, d_model), lambda i, j: (i, 0)),  # x rows
            pl.BlockSpec((tile_ff, d_model), lambda i, j: (j, 0)),    # W1 tile
            pl.BlockSpec((1, tile_ff), lambda i, j: (0, j)),          # b1 tile
            pl.BlockSpec((d_model, tile_ff), lambda i, j: (0, j)),    # W2 tile
            pl.BlockSpec((1, d_model), lambda i, j: (0, 0)),          # b2
        ]
        out_specs = pl.BlockSpec((tile_rows, d_model), lambda i, j: (i, 0))
        if use_scratch:
            scratch_shapes = [pltpu.VMEM((tile_rows, d_model), jnp.float32)]
            kernel = _ffn_kernel_scratch
        else:
            scratch_shapes = []
            kernel = _ffn_kernel_acc_out
        dim_sem = ("parallel", "arbitrary")

    out = pl.pallas_call(
        kernel,
        out_shape=jax.ShapeDtypeStruct((n_rows, d_model), out_dtype),
        grid_spec=pltpu.PrefetchScalarGridSpec(
            num_scalar_prefetch=0,
            grid=grid,
            in_specs=in_specs,
            out_specs=out_specs,
            scratch_shapes=scratch_shapes,
        ),
        compiler_params=pltpu.CompilerParams(
            dimension_semantics=dim_sem,
            vmem_limit_bytes=vmem_limit,
        ),
    )(x2d, w1, b1r, w2, b2r)

    return out.reshape(orig_shape)


def _reference_ffn(x, w1, b1, w2, b2):
    """Pure-JAX reference matching FeedForwardBlock.forward (eval mode)."""
    h = jnp.maximum(
        jnp.dot(x, w1.T, precision=jax.lax.Precision.HIGHEST) + b1, 0.0)
    return jnp.dot(h, w2.T, precision=jax.lax.Precision.HIGHEST) + b2


if __name__ == "__main__":
    key = jax.random.PRNGKey(0)
    kx, kw1, kb1, kw2, kb2 = jax.random.split(key, 5)

    # Small but lane-dense shapes (d_model multiple of 128).
    batch, seq, d_model, d_ff = 2, 8, 128, 256

    x = jax.random.normal(kx, (batch, seq, d_model), dtype=jnp.float32)
    w1 = jax.random.normal(kw1, (d_ff, d_model), dtype=jnp.float32) * 0.05
    b1 = jax.random.normal(kb1, (d_ff,), dtype=jnp.float32) * 0.05
    w2 = jax.random.normal(kw2, (d_model, d_ff), dtype=jnp.float32) * 0.05
    b2 = jax.random.normal(kb2, (d_model,), dtype=jnp.float32) * 0.05

    ref = _reference_ffn(x, w1, b1, w2, b2)

    # 1) f32, auto tiles (grid_ff == 1 single-pass kernel; >= 2 row blocks).
    out = jax.block_until_ready(feed_forward_block(x, w1, b1, w2, b2))
    assert out.shape == x.shape
    err = float(jnp.max(jnp.abs(out - ref)))
    assert jnp.allclose(out, ref, atol=1e-2, rtol=1e-2), f"f32 path: {err}"

    # 2) f32 with forced d_ff tiling (exercises the accumulate-into-o_ref path).
    out_t = jax.block_until_ready(
        feed_forward_block(x, w1, b1, w2, b2, tile_ff=128))
    err = float(jnp.max(jnp.abs(out_t - ref)))
    assert jnp.allclose(out_t, ref, atol=1e-2, rtol=1e-2), f"tiled-ff path: {err}"

    # 3) bf16 compute path (f32 params cast in the wrapper, fp32 accumulation).
    out_bf = jax.block_until_ready(
        feed_forward_block(x, w1, b1, w2, b2, compute_dtype=jnp.bfloat16))
    assert out_bf.dtype == x.dtype
    err = float(jnp.max(jnp.abs(out_bf - ref)))
    assert jnp.allclose(out_bf, ref, atol=1e-1, rtol=1e-1), f"bf16 path: {err}"

    # 4) bf16 end-to-end with forced d_ff tiling (exercises the scratch path).
    out_b = jax.block_until_ready(
        feed_forward_block(x.astype(jnp.bfloat16), w1.astype(jnp.bfloat16), b1,
                           w2.astype(jnp.bfloat16), b2, tile_ff=128))
    assert out_b.dtype == jnp.bfloat16
    err = float(jnp.max(jnp.abs(out_b.astype(jnp.float32) - ref)))
    assert jnp.allclose(out_b.astype(jnp.float32), ref, atol=1e-1, rtol=1e-1), (
        f"bf16 scratch path: {err}")

    print("KERNEL_OK")
</pallas_src>

<mosaic_0001>
module attributes {stable_mosaic.version = 11 : i64} {
  func.func @_ffn_kernel_single(%arg0: i32, %arg1: memref<8x128xf32, #tpu.memory_space<vmem>>, %arg2: memref<256x128xf32, #tpu.memory_space<vmem>>, %arg3: memref<1x256xf32, #tpu.memory_space<vmem>>, %arg4: memref<128x256xf32, #tpu.memory_space<vmem>>, %arg5: memref<1x128xf32, #tpu.memory_space<vmem>>, %arg6: memref<8x128xf32, #tpu.memory_space<vmem>>) attributes {dimension_semantics = [#tpu.dimension_semantics<parallel>], iteration_bounds = array<i64: 2>, scalar_prefetch = 0 : i64, scratch_operands = 0 : i64, tpu.core_type = #tpu.core_type<tc>, window_params = [{transform_indices = @transform_0, window_bounds = array<i64: 8, 128>}, {pipeline_mode = #tpu.pipeline_mode<synchronous>, transform_indices = @transform_1, window_bounds = array<i64: 256, 128>}, {pipeline_mode = #tpu.pipeline_mode<synchronous>, transform_indices = @transform_2, window_bounds = array<i64: 1, 256>}, {pipeline_mode = #tpu.pipeline_mode<synchronous>, transform_indices = @transform_3, window_bounds = array<i64: 128, 256>}, {pipeline_mode = #tpu.pipeline_mode<synchronous>, transform_indices = @transform_4, window_bounds = array<i64: 1, 128>}, {transform_indices = @transform_5, window_bounds = array<i64: 8, 128>}]} {
    %c0 = arith.constant 0 : index
    %c0_0 = arith.constant 0 : index
    %0 = vector.load %arg1[%c0, %c0_0] : memref<8x128xf32, #tpu.memory_space<vmem>>, vector<8x128xf32>
    %c0_1 = arith.constant 0 : index
    %c0_2 = arith.constant 0 : index
    %1 = vector.load %arg2[%c0_1, %c0_2] : memref<256x128xf32, #tpu.memory_space<vmem>>, vector<256x128xf32>
    %c0_3 = arith.constant 0 : index
    %c0_4 = arith.constant 0 : index
    %2 = vector.load %arg3[%c0_3, %c0_4] : memref<1x256xf32, #tpu.memory_space<vmem>>, vector<1x256xf32>
    %c0_5 = arith.constant 0 : index
    %c0_6 = arith.constant 0 : index
    %3 = vector.load %arg4[%c0_5, %c0_6] : memref<128x256xf32, #tpu.memory_space<vmem>>, vector<128x256xf32>
    %cst = arith.constant dense<0.000000e+00> : vector<8x256xf32>
    %4 = tpu.matmul %0, %1, %cst {dimension_numbers = #tpu.dot_dimension_numbers<[1], [1], [0], [0], [0, 0, 1, 0], [], []>} : vector<8x128xf32>, vector<256x128xf32>, vector<8x256xf32> -> vector<8x256xf32>
    %5 = vector.broadcast %2 : vector<1x256xf32> to vector<8x256xf32>
    %6 = arith.addf %4, %5 : vector<8x256xf32>
    %cst_7 = arith.constant 0.000000e+00 : f32
    %7 = vector.broadcast %cst_7 : f32 to vector<8x256xf32>
    %8 = arith.maximumf %6, %7 : vector<8x256xf32>
    %cst_8 = arith.constant dense<0.000000e+00> : vector<8x128xf32>
    %9 = tpu.matmul %8, %3, %cst_8 {dimension_numbers = #tpu.dot_dimension_numbers<[1], [1], [0], [0], [0, 0, 1, 0], [], []>} : vector<8x256xf32>, vector<128x256xf32>, vector<8x128xf32> -> vector<8x128xf32>
    %c0_9 = arith.constant 0 : index
    %c0_10 = arith.constant 0 : index
    %10 = vector.load %arg5[%c0_9, %c0_10] : memref<1x128xf32, #tpu.memory_space<vmem>>, vector<1x128xf32>
    %11 = vector.broadcast %10 : vector<1x128xf32> to vector<8x128xf32>
    %12 = arith.addf %9, %11 : vector<8x128xf32>
    %c0_11 = arith.constant 0 : index
    %c0_12 = arith.constant 0 : index
    %13 = vector.load %arg6[%c0_11, %c0_12] : memref<8x128xf32, #tpu.memory_space<vmem>>, vector<8x128xf32>
    tpu.vector_store %arg6[%c0_11, %c0_12], %12 {strides = array<i32>} : memref<8x128xf32, #tpu.memory_space<vmem>>, vector<8x128xf32>,
    return
  }
  func.func @transform_0(%arg0: i32) -> (i32, i32) {
    %c0_i32 = arith.constant 0 : i32
    %c0_i32_0 = arith.constant 0 : i32
    return %arg0, %c0_i32 : i32, i32
  }
  func.func @transform_1(%arg0: i32) -> (i32, i32) {
    %c0_i32 = arith.constant 0 : i32
    %c0_i32_0 = arith.constant 0 : i32
    %c0_i32_1 = arith.constant 0 : i32
    return %c0_i32, %c0_i32_0 : i32, i32
  }
  func.func @transform_2(%arg0: i32) -> (i32, i32) {
    %c0_i32 = arith.constant 0 : i32
    %c0_i32_0 = arith.constant 0 : i32
    %c0_i32_1 = arith.constant 0 : i32
    return %c0_i32, %c0_i32_0 : i32, i32
  }
  func.func @transform_3(%arg0: i32) -> (i32, i32) {
    %c0_i32 = arith.constant 0 : i32
    %c0_i32_0 = arith.constant 0 : i32
    %c0_i32_1 = arith.constant 0 : i32
    return %c0_i32, %c0_i32_0 : i32, i32
  }
  func.func @transform_4(%arg0: i32) -> (i32, i32) {
    %c0_i32 = arith.constant 0 : i32
    %c0_i32_0 = arith.constant 0 : i32
    %c0_i32_1 = arith.constant 0 : i32
    return %c0_i32, %c0_i32_0 : i32, i32
  }
  func.func @transform_5(%arg0: i32) -> (i32, i32) {
    %c0_i32 = arith.constant 0 : i32
    %c0_i32_0 = arith.constant 0 : i32
    return %arg0, %c0_i32 : i32, i32
  }
}

</mosaic_0001>

<bundles_post_ra>
// kernel: tpu_custom_call.1
= control target key start
LH: loop header
LB: loop body
LE: loop exit
PB: predicated region body
PF: predicated region fallthrough
CT: control target
= control target key end

     0   :  { %10 = vsyncpa [#allocation3], 0  ;;  %s1225_s0 = inlined_call_operand.hbm [shape: f32[16,128], index: 0, kind: input, shape index: {}]   ;;  %s1226_s1 = inlined_call_operand.hbm [shape: f32[256,128], index: 1, kind: input, shape index: {}]   ;;  %s1227_s2 = inlined_call_operand.vmem [shape: f32[1,256], index: 2, kind: input, shape index: {}]   ;;  %s1228_s3 = inlined_call_operand.hbm [shape: f32[128,256], index: 3, kind: input, shape index: {}]   ;;  %s1229_s4 = inlined_call_operand.vmem [shape: f32[1,128], index: 4, kind: input, shape index: {}]   ;;  %s1230_s5 = inlined_call_operand.hbm [shape: f32[16,128], index: 5, kind: output, shape index: {}]  }
   0x1   :  { %12 = vsyncpa [#allocation3 + $0x1], 0 }
   0x2   :  { %13 = vsyncpa [#allocation6], 0 }
   0x3   :  { %14 = vsyncpa [#allocation4], 0 }
   0x4   :  { %16 = vsyncpa [#allocation4 + $0x1], 0  ;;  %s982_s18 = smov 0   ;;  %s984_s19 = smov 0  }
   0x5   :  { %s986_s20 = smov 0   ;;  %s988_s21 = smov 0  }
   0x6 LB: > { %s1003_s22 = sadd.s32 4294967295, %s942_s21   ;;  %s600_s23 = sadd.s32 4294967294, %s942_s21   ;;  %s942_s21 = sphi %s988_s21, %s1250_s21   ;;  %s938_s20 = sphi %s986_s20, %s1249_s20   ;;  %s934_s19 = sphi %s984_s19, %s1248_s19   ;;  %s930_s18 = sphi %s982_s18, %s1247_s18  }
   0x7   : > { %p42_p0 = scmp.ne.s32.totalorder %s934_s19, %s930_s18  ;;  %p1231_p1 = scmp.eq.s32.totalorder %s1003_s22, 0 }
   0x8   : > { %p156_p3 = scmp.eq.s32.totalorder %s600_s23, 1  ;;  %p601_p5 = scmp.ge.s32.totalorder %s942_s21, 1 }
   0x9   : > { %p1012_p4 = por %p1231_p1, %p42_p0  ;;  %p163_p7 = scmp.lt.s32.totalorder %s942_s21, 3 }
   0xa   : > { %p1017_p6 = por %p156_p3, %p42_p0  ;;  %s944_s27 = smov [#allocation5]  }
   0xb   : > { %s1234_s24 = scalar_select %p1012_p4, 1, 0 }
   0xc   : > { %s1235_s25 = scalar_select %p1017_p6, 1, 0 }
   0xd   : > { %p1022_p8 = pnand %p601_p5, %p163_p7  ;;  %s175_s28 = sshll.u32 %s944_s27, 4  ;;  %s1026_s28 = int_to_ptr.vmem [resolvable:$true] %s175_s28 }
   0xe   : > { %s945_s30 = smov [#allocation7]   ;;  %s786_s9 = scalar_lea.hbm %s1226_s1, 4096 }
   0xf   : > { %p727_p9 = pneg %p1022_p8  ;;  %s191_s6 = sshll.u32 %s945_s30, 4  ;;  %s1037_s6 = int_to_ptr.vmem [resolvable:$true] %s191_s6 }
  0x10   : > { %p787_p12 = scmp.ne.s32.totalorder %s1226_s1, %s786_s9  ;;  %p793_p5 = scmp.lt.u32.totalorder %s786_s9, %s1226_s1 }
  0x11   : > { %p1033_p11 = pnand %p727_p9, %p1231_p1 }
  0x13   : > { %p788_p13 = pneg %p1033_p11 }
  0x15   : > { %p789_p0 = pnand %p788_p13, %p787_p12 }
  0x17   : > { %p790_p3 = pneg %p789_p0 }
  0x19   : > { %p795_p7 = pnand %p793_p5, %p790_p3 }
  0x1b   : > { %798 = shalt.err (!%p795_p7)
}
  0x1c   : > { %s799_s14 = scalar_lea.vmem %s1026_s28, 4096  ;;  %p807_p2 = scmp.lt.s32.totalorder %s1026_s28, %s1026_s28 }
  0x1d   : > { %p800_p9 = scmp.ne.s32.totalorder %s1026_s28, %s799_s14  ;;  %p808_p12 = scmp.lt.s32.totalorder %s799_s14, %s799_s14 }
  0x1f   : > { %p802_p10 = pnand %p800_p9, %p788_p13  ;;  %p809_p0 = por %p808_p12, %p807_p2 }
  0x21   : > { %p803_p1 = pneg %p802_p10 }
  0x23   : > { %p810_p6 = pnand %p809_p0, %p803_p1 }
  0x25   : > { %813 = shalt.err (!%p810_p6)
}
  0x26   : > { %s946_s15 = smov 128   ;;  %s947_s16 = smov 8  }
  0x27   : > { %730 = dma.hbm_to_vmem [thread:$0]  (!%p1033_p11), %s1226_s1, 4096, %s1026_s28, [#allocation6], %s946_s15, %s946_s15, %s947_s16  }
  0x28   : > { %s814_s7 = scalar_lea.hbm %s1228_s3, 4096 }
  0x29   : > { %p815_p2 = scmp.ne.s32.totalorder %s1228_s3, %s814_s7  ;;  %p821_p10 = scmp.lt.u32.totalorder %s814_s7, %s1228_s3 }
  0x2b   : > { %p817_p1 = pnand %p815_p2, %p788_p13 }
  0x2d   : > { %p818_p6 = pneg %p817_p1 }
  0x2f   : > { %p823_p3 = pnand %p821_p10, %p818_p6 }
  0x31   : > { %826 = shalt.err (!%p823_p3)
}
  0x32   : > { %s827_s28 = scalar_lea.vmem %s1037_s6, 4096  ;;  %p835_p12 = scmp.lt.s32.totalorder %s1037_s6, %s1037_s6 }
  0x33   : > { %p828_p5 = scmp.ne.s32.totalorder %s1037_s6, %s827_s28  ;;  %p836_p0 = scmp.lt.s32.totalorder %s827_s28, %s827_s28 }
  0x35   : > { %p830_p7 = pnand %p828_p5, %p788_p13  ;;  %p837_p2 = por %p836_p0, %p835_p12 }
  0x37   : > { %p831_p9 = pneg %p830_p7 }
  0x39   : > { %p838_p1 = pnand %p837_p2, %p831_p9 }
  0x3b   : > { %841 = shalt.err (!%p838_p1)
}
  0x3c   : > { %s948_s12 = smov 256   ;;  %s949_s13 = smov 16  }
  0x3d   : > { %733 = dma.hbm_to_vmem [thread:$0]  (!%p1033_p11), %s1228_s3, 4096, %s1037_s6, [#allocation6], %s948_s12, %s948_s12, %s949_s13  }
  0x3e   : > { %s1092_s16 = sadd.s32 1, %s942_s21   ;;  %s29_s23 = sadd.s32 1, %s938_s20 }
  0x3f   : > { %s26_s17 = ssub.s32 %s942_s21, %s1092_s16  ;;  %p36_p6 = scmp.ne.s32.totalorder %s938_s20, %s934_s19 }
  0x40   : > { %p27_p13 = scmp.eq.s32.totalorder %s26_s17, 0  ;;  %p37_p10 = scmp.eq.s32.totalorder %s942_s21, 0 }
  0x41   : > { %p1238_p5 = scmp.eq.s32.totalorder %s1003_s22, 1  ;;  %p744_p9 = scmp.lt.s32.totalorder %s942_s21, 2 }
  0x42   : > { %s1101_s27 = scalar_select %p27_p13, %s938_s20, %s29_s23  }
  0x43   : > { %p38_p3 = por %p37_p10, %p36_p6  ;;  %p1105_p7 = por %p1238_p5, %p36_p6 }
  0x44   : > { %s208_s29 = sand.u32 1, %s938_s20   ;;  %s606_s6 = sshll.u32 %s942_s21, 7 }
  0x45   : > { %s1239_s30 = scalar_select %p1105_p7, 1, 0 }
  0x46   : > { %s605_s7 = sshll.u32 %s208_s29, 3  ;;  %s1115_s10 = scalar_lea.hbm %s1225_s0, %s606_s6 }
  0x47   : > { %s212_s11 = scalar_lea.vmem [#allocation2], %s605_s7  ;;  %p1119_p11 = pnand %p744_p9, %p38_p3 }
  0x48   : > { %s219_s28 = sshll.u32 %s212_s11, 4  ;;  %s209_s13 = scalar_lea.sflag [#allocation3], %s208_s29  ;;  %s1117_s28 = int_to_ptr.vmem [resolvable:$true] %s219_s28 }
  0x49   : > { %s842_s14 = scalar_lea.hbm %s1115_s10, 128  ;;  %p844_p0 = pneg %p1119_p11 }
  0x4a   : > { %p843_p12 = scmp.ne.s32.totalorder %s1115_s10, %s842_s14  ;;  %s847_s23 = scalar_lea.hbm %s1225_s0, 256 }
  0x4b   : > { %p848_p13 = scmp.lt.u32.totalorder %s1115_s10, %s1225_s0  ;;  %p849_p6 = scmp.lt.u32.totalorder %s847_s23, %s842_s14 }
  0x4c   : > { %p845_p2 = pnand %p844_p0, %p843_p12  ;;  %p851_p3 = scmp.lt.u32.totalorder %s842_s14, %s1115_s10 }
  0x4d   : > { %p850_p10 = por %p849_p6, %p848_p13 }
  0x4e   : > { %p846_p1 = pneg %p845_p2 }
  0x4f   : > { %p852_p5 = por %p851_p3, %p850_p10 }
  0x51   : > { %p853_p9 = pnand %p852_p5, %p846_p1 }
  0x53   : > { %856 = shalt.err (!%p853_p9)
}
  0x54   : > { %s857_s29 = scalar_lea.vmem %s1117_s28, 128  ;;  %s950_s8 = smov [#allocation2]  }
  0x55   : > { %p858_p12 = scmp.ne.s32.totalorder %s1117_s28, %s857_s29  ;;  %s862_s9 = sshll.u32 %s950_s8, 4  ;;  %s863_s9 = int_to_ptr.vmem [resolvable:$false] %s862_s9 }
  0x56   : > { %s864_s11 = scalar_lea.vmem %s863_s9, 256  ;;  %p865_p4 = scmp.lt.s32.totalorder %s1117_s28, %s863_s9 }
  0x57   : > { %p860_p2 = pnand %p858_p12, %p844_p0  ;;  %p866_p13 = scmp.lt.s32.totalorder %s864_s11, %s857_s29 }
  0x59   : > { %p861_p7 = pneg %p860_p2  ;;  %p867_p6 = por %p866_p13, %p865_p4 }
  0x5b   : > { %p868_p10 = pnand %p867_p6, %p861_p7 }
  0x5d   : > { %871 = shalt.err (!%p868_p10)
}
  0x5e   : > { %737 = dma.hbm_to_vmem [thread:$0]  (!%p1119_p11), %s1115_s10, 128, %s1117_s28, %s209_s13  }
  0x5f   : > { %228 = sbr.rel (%p1022_p8) target bundleno = 619 (0x26b), region = 40  ;;  %s1151_s14 = sand.u32 (!%p1022_p8), 1, %s934_s19  }
  0x60   : > { %s608_s15 = sshll.u32 (!%p1022_p8), %s1151_s14, 3  ;;  %s231_s17 = scalar_lea.sflag (!%p1022_p8), [#allocation3], %s1151_s14 }
  0x61   : > { %s234_s23 = scalar_lea.vmem (!%p1022_p8), [#allocation2], %s608_s15  ;;  %p1241_p4 = scmp.ne.s32.totalorder (!%p1022_p8), %s1234_s24, 0 }
  0x66   : > { %917 = dma.done.wait (%p1241_p4), %s231_s17, 128  }
  0x67   : > { %919 = vsyncadd (%p1241_p4), %s231_s17, 4294967168  ;;  %p1242_p7 = scmp.eq.s32.totalorder %s1003_s22, 0 }
  0x69   : > { %921 = dma.done.wait (%p1242_p7), [#allocation6], 8192   ;;  %p1243_p8 = pmov %p1242_p7 }
  0x6a   : > { %v286_v0 = vld [vmem:[#allocation5 + $0x80] sm:$0xff]  ;;  %v287_v1 = vld [vmem:[#allocation5 + $0x88] sm:$0xff]  ;;  %v288_v5 = vld [vmem:[#allocation5 + $0x90] sm:$0xff]  ;;  %s614_s12 = sshll.u32 %s1003_s22, 7  ;;  %s268_s13 = scalar_lea.vmem [#allocation8], %s608_s15 }
  0x6b   : > { %923 = vsyncadd (%p1243_p8), [#allocation6], 4294959104  ;;  %v270_v2 = vld [vmem:[#allocation5] sm:$0xff]  ;;  %v651_v3 = vpack.c.bf16 %v287_v1, %v286_v0  ;;  %v271_v4 = vld [vmem:[#allocation5 + $0x8] sm:$0xff]  ;;  %s511_s7 = sshll.u32 %s268_s13, 4  ;;  %s1181_s8 = scalar_lea.hbm %s1230_s5, %s614_s12  ;;  %s1183_s7 = int_to_ptr.vmem [resolvable:$true] %s511_s7 }
  0x6c   : > { %v289_v6 = vld [vmem:[#allocation5 + $0x98] sm:$0xff]  ;;  %v653_v7 = vpack.c.bf16 %v271_v4, %v270_v2  ;;  %v272_v9 = vld [vmem:[#allocation5 + $0x10] sm:$0xff]  ;;  %v290_v11 = vld [vmem:[#allocation5 + $0xa0] sm:$0xff]  ;;  %s498_s9 = scalar_lea.sflag [#allocation4], %s1151_s14  ;;  %s872_s11 = scalar_lea.vmem %s1183_s7, 128 }
  0x6d   : > { %v655_v8 = vpack.c.bf16 %v289_v6, %v288_v5  ;;  %652 = vmatprep.subr.bf16.mxu0 %v651_v3  ;;  %v273_v10 = vld [vmem:[#allocation5 + $0x18] sm:$0xff]  ;;  %v291_v12 = vld [vmem:[#allocation5 + $0xa8] sm:$0xff]  ;;  %v303_v18 = vld [vmem:[#allocation7] sm:$0xff]  ;;  %p873_p11 = scmp.ne.s32.totalorder %s1183_s7, %s872_s11  ;;  %p1244_p0 = scmp.ne.s32.totalorder %s1239_s30, 0 }
  0x6e   : > { %654 = vmatpush3.bf16.xpose.msra.mxu0 %v653_v7  ;;  %v657_v13 = vpack.c.bf16 %v273_v10, %v272_v9  ;;  %v659_v14 = vpack.c.bf16 %v291_v12, %v290_v11  ;;  %v1165_v15 = vld [vmem:[%s234_s23] sm:$0xff]  ;;  %v304_v16 = vld [vmem:[#allocation7 + $0x8] sm:$0xff]  ;;  %v274_v23 = vld [vmem:[#allocation5 + $0x20] sm:$0xff]  ;;  %s951_s22 = smov [#allocation8]  }
  0x6f   : > { %656 = vmatprep.subr.bf16.mxu0 %v655_v8  ;;  %649 = vmatprep.mubr.f32.mxu0 %v1165_v15  ;;  %v306_v17 = vld [vmem:[#allocation7 + $0x18] sm:$0xff]  ;;  %v305_v20 = vld [vmem:[#allocation7 + $0x10] sm:$0xff]  ;;  %v308_v21 = vld [vmem:[#allocation7 + $0x28] sm:$0xff]  ;;  %p874_p1 = pnand %p873_p11, %p1244_p0  ;;  %s876_s15 = sshll.u32 %s951_s22, 4  ;;  %s877_s15 = int_to_ptr.vmem [resolvable:$false] %s876_s15 }
  0x70   : > { %v683_v19 = vpack.c.bf16 %v306_v17, %v304_v16  ;;  %v310_v22 = vld [vmem:[#allocation7 + $0x38] sm:$0xff]  ;;  %v275_v24 = vld [vmem:[#allocation5 + $0x28] sm:$0xff]  ;;  %v685_v25 = vpack.c.bf16 %v305_v20, %v303_v18  ;;  %v292_v27 = vld [vmem:[#allocation5 + $0xb0] sm:$0xff]  ;;  %s878_s17 = scalar_lea.vmem %s877_s15, 256  ;;  %p879_p5 = scmp.lt.s32.totalorder %s1183_s7, %s877_s15 }
  0x71   : > { %v687_v26 = vpack.c.bf16 %v310_v22, %v308_v21  ;;  %v293_v28 = vld [vmem:[#allocation5 + $0xb8] sm:$0xff]  ;;  %v661_v29 = vpack.c.bf16 %v275_v24, %v274_v23  ;;  %v307_v30 = vld [vmem:[#allocation7 + $0x20] sm:$0xff]  ;;  %v309_v31 = vld [vmem:[#allocation7 + $0x30] sm:$0xff]  ;;  %p875_p3 = pneg %p874_p1  ;;  %p880_p9 = scmp.lt.s32.totalorder %s878_s17, %s872_s11 }
  0x72   : > { %684 = vmatprep.subr.bf16.mxu1 %v683_v19  ;;  %v663_v32 = vpack.c.bf16 %v293_v28, %v292_v27  ;;  %v312_v33 = vld [vmem:[#allocation7 + $0x48] sm:$0xff]  ;;  %v314_v34 = vld [vmem:[#allocation7 + $0x58] sm:$0xff]  ;;  %v689_v35 = vpack.c.bf16 %v309_v31, %v307_v30  ;;  %v276_v37 = vld [vmem:[#allocation5 + $0x30] sm:$0xff] }
  0x73   : > { %686 = vmatpush1.bf16.xpose.msra.mxu1 %v685_v25  ;;  %v691_v36 = vpack.c.bf16 %v314_v34, %v312_v33  ;;  %v277_v38 = vld [vmem:[#allocation5 + $0x38] sm:$0xff]  ;;  %v294_v39 = vld [vmem:[#allocation5 + $0xc0] sm:$0xff]  ;;  %v295_v40 = vld [vmem:[#allocation5 + $0xc8] sm:$0xff]  ;;  %v336_v34 = vlaneseq  ;;  %p881_p12 = por %p880_p9, %p879_p5 }
  0x74   : > { %688 = vmatprep.subr.bf16.mxu1 %v687_v26  ;;  %v665_v41 = vpack.c.bf16 %v277_v38, %v276_v37  ;;  %v311_v42 = vld [vmem:[#allocation7 + $0x40] sm:$0xff]  ;;  %v313_v43 = vld [vmem:[#allocation7 + $0x50] sm:$0xff]  ;;  %v667_v44 = vpack.c.bf16 %v295_v40, %v294_v39  ;;  %v316_v45 = vld [vmem:[#allocation7 + $0x68] sm:$0xff] }
  0x75   : > { %v318_v46 = vld [vmem:[#allocation7 + $0x78] sm:$0xff]  ;;  %v693_v47 = vpack.c.bf16 %v313_v43, %v311_v42  ;;  %v278_v49 = vld [vmem:[#allocation5 + $0x40] sm:$0xff]  ;;  %v279_v50 = vld [vmem:[#allocation5 + $0x48] sm:$0xff]  ;;  %p882_p2 = pnand %p881_p12, %p875_p3 }
  0x76   : > { %658 = vmatpush3.bf16.xpose.msra.mxu0 %v657_v13  ;;  %v695_v48 = vpack.c.bf16 %v318_v46, %v316_v45  ;;  %v296_v51 = vld [vmem:[#allocation5 + $0xd0] sm:$0xff]  ;;  %v297_v52 = vld [vmem:[#allocation5 + $0xd8] sm:$0xff]  ;;  %v669_v53 = vpack.c.bf16 %v279_v50, %v278_v49  ;;  %v315_v54 = vld [vmem:[#allocation7 + $0x60] sm:$0xff] }
  0x77   : > { %660 = vmatprep.subr.bf16.mxu0 %v659_v14  ;;  %v317_v55 = vld [vmem:[#allocation7 + $0x70] sm:$0xff]  ;;  %v671_v56 = vpack.c.bf16 %v297_v52, %v296_v51  ;;  %v320_v57 = vld [vmem:[#allocation7 + $0x88] sm:$0xff]  ;;  %v322_v58 = vld [vmem:[#allocation7 + $0x98] sm:$0xff] }
  0x78   : > { %v697_v59 = vpack.c.bf16 %v317_v55, %v315_v54  ;;  %v699_v60 = vpack.c.bf16 %v322_v58, %v320_v57  ;;  %v280_v61 = vld [vmem:[#allocation5 + $0x50] sm:$0xff]  ;;  %v281_v62 = vld [vmem:[#allocation5 + $0x58] sm:$0xff]  ;;  %v298_v63 = vld [vmem:[#allocation5 + $0xe0] sm:$0xff] }
  0x79   : > { %v299_v0 = vld [vmem:[#allocation5 + $0xe8] sm:$0xff]  ;;  %v673_v1 = vpack.c.bf16 %v281_v62, %v280_v61  ;;  %v319_v2 = vld [vmem:[#allocation7 + $0x80] sm:$0xff]  ;;  %v321_v3 = vld [vmem:[#allocation7 + $0x90] sm:$0xff] }
  0x7a   : > { %v675_v4 = vpack.c.bf16 %v299_v0, %v298_v63  ;;  %v324_v5 = vld [vmem:[#allocation7 + $0xa8] sm:$0xff]  ;;  %v326_v6 = vld [vmem:[#allocation7 + $0xb8] sm:$0xff]  ;;  %v701_v7 = vpack.c.bf16 %v321_v3, %v319_v2  ;;  %v282_v9 = vld [vmem:[#allocation5 + $0x60] sm:$0xff] }
  0x7b   : > { %690 = vmatpush1.bf16.xpose.msra.mxu1 %v689_v35  ;;  %v703_v8 = vpack.c.bf16 %v326_v6, %v324_v5  ;;  %v283_v10 = vld [vmem:[#allocation5 + $0x68] sm:$0xff]  ;;  %v300_v11 = vld [vmem:[#allocation5 + $0xf0] sm:$0xff]  ;;  %v301_v12 = vld [vmem:[#allocation5 + $0xf8] sm:$0xff]  ;;  %v337_v35 = vshrl.u32 %v336_v34, 7 }
  0x7c   : > { %692 = vmatprep.subr.bf16.mxu1 %v691_v36  ;;  %v677_v13 = vpack.c.bf16 %v283_v10, %v282_v9  ;;  %v323_v14 = vld [vmem:[#allocation7 + $0xa0] sm:$0xff]  ;;  %v325_v16 = vld [vmem:[#allocation7 + $0xb0] sm:$0xff]  ;;  %v679_v17 = vpack.c.bf16 %v301_v12, %v300_v11  ;;  %v328_v18 = vld [vmem:[#allocation7 + $0xc8] sm:$0xff] }
  0x7d   : > { %v330_v19 = vld [vmem:[#allocation7 + $0xd8] sm:$0xff]  ;;  %v705_v20 = vpack.c.bf16 %v325_v16, %v323_v14  ;;  %v284_v22 = vld [vmem:[#allocation5 + $0x70] sm:$0xff]  ;;  %v327_v25 = vld [vmem:[#allocation7 + $0xc0] sm:$0xff]  ;;  %v338_v36 = vsub.s32 0, %v337_v35  ;;  %v342_v38 = vsub.s32 1, %v337_v35 }
  0x7e   : > { %662 = vmatpush3.bf16.xpose.msra.mxu0 %v661_v29  ;;  %v707_v21 = vpack.c.bf16 %v330_v19, %v328_v18  ;;  %v285_v23 = vld [vmem:[#allocation5 + $0x78] sm:$0xff]  ;;  %v329_v26 = vld [vmem:[#allocation7 + $0xd0] sm:$0xff]  ;;  %v332_v27 = vld [vmem:[#allocation7 + $0xe8] sm:$0xff] }
  0x7f   : > { %664 = vmatprep.subr.bf16.mxu0 %v663_v32  ;;  %v681_v24 = vpack.c.bf16 %v285_v23, %v284_v22  ;;  %v334_v28 = vld [vmem:[#allocation7 + $0xf8] sm:$0xff]  ;;  %v709_v29 = vpack.c.bf16 %v329_v26, %v327_v25  ;;  %v331_v31 = vld [vmem:[#allocation7 + $0xe0] sm:$0xff]  ;;  %v333_v32 = vld [vmem:[#allocation7 + $0xf0] sm:$0xff] }
  0x80   : > { %v711_v30 = vpack.c.bf16 %v334_v28, %v332_v27  ;;  %v713_v33 = vpack.c.bf16 %v333_v32, %v331_v31  ;;  %v302_v37 = vld [vmem:[%s1227_s2] sm:$0x3] }
  0x81   : > { %v339_v39 = vrot.slane %v302_v37, %v338_v36  ;;  %v343_v40 = vrot.slane %v302_v37, %v342_v38  ;;  %v612_v46 = vld [vmem:[%s1229_s4] ss:$0 sm:$0xff] }
  0x83   : > { %694 = vmatpush1.bf16.xpose.msra.mxu1 %v693_v47 }
  0x84   : > { %696 = vmatprep.subr.bf16.mxu1 %v695_v48 }
  0x86   : > { %666 = vmatpush3.bf16.xpose.msra.mxu0 %v665_v41 }
  0x87   : > { %668 = vmatprep.subr.bf16.mxu0 %v667_v44 }
  0x8b   : > { %698 = vmatpush1.bf16.xpose.msra.mxu1 %v697_v59 }
  0x8c   : > { %700 = vmatprep.subr.bf16.mxu1 %v699_v60 }
  0x8e   : > { %670 = vmatpush3.bf16.xpose.msra.mxu0 %v669_v53 }
  0x8f   : > { %672 = vmatprep.subr.bf16.mxu0 %v671_v56 }
  0x93   : > { %702 = vmatpush1.bf16.xpose.msra.mxu1 %v701_v7 }
  0x94   : > { %704 = vmatprep.subr.bf16.mxu1 %v703_v8 }
  0x96   : > { %674 = vmatpush3.bf16.xpose.msra.mxu0 %v673_v1 }
  0x97   : > { %676 = vmatprep.subr.bf16.mxu0 %v675_v4 }
  0x9b   : > { %706 = vmatpush1.bf16.xpose.msra.mxu1 %v705_v20 }
  0x9c   : > { %708 = vmatprep.subr.bf16.mxu1 %v707_v21 }
  0x9e   : > { %678 = vmatpush3.bf16.xpose.msra.mxu0 %v677_v13 }
  0x9f   : > { %680 = vmatprep.subr.bf16.mxu0 %v679_v17 }
  0xa3   : > { %710 = vmatpush1.bf16.xpose.msra.mxu1 %v709_v29 }
  0xa4   : > { %712 = vmatprep.subr.bf16.mxu1 %v711_v30 }
  0xa6   : > { %682 = vmatpush3.bf16.xpose.msra.mxu0 %v681_v24 }
  0xab   : > { %714 = vmatpush1.bf16.xpose.msra.mxu1 %v713_v33 }
  0xad   : > { %650 = vmatmul.mubr.f32.vlgmr.msra.gmra.mrb[0].mxu0 %v1165_v15 }
 0x180   : > { %v412_v41 = vpop.f32.mrb[0].mxu0 }
 0x181   : > { %v413_v42 = vadd.f32 %v412_v41, %v339_v39  ;;  %v414_v43 = vpop.f32.mrb[1].mxu0 }
 0x182   : > { %v415_v15 = vadd.f32 %v414_v43, %v343_v40 }
 0x183   : > { %v417_v45 = vmax.f32 %v413_v42, 0.0 }
 0x184   : > { %v418_v44 = vmax.f32 %v415_v15, 0.0 }
 0x186   : > { %490 = vmatprep.mubr.f32.mxu1 %v418_v44 }
 0x187   : > { %491 = vmatmul.mubr.f32.vlgmr.msra.gmra.mrb[0].mxu1 %v417_v45 }
 0x25a   : > { %v492_v47 = vpop.f32.mrb[0].mxu1 }
 0x25b   : > { %v493_v48 = vadd.f32 %v612_v46, %v492_v47  ;;  %v494_v49 = vpop.f32.mrb[1].mxu1 }
 0x25d   : > { %496 = vst [vmem:[%s268_s13] sm:$0xff] %v493_v48 }
 0x25e   : > { %885 = shalt.err (!%p882_p2)
}
 0x25f   : > { %s886_s14 = scalar_lea.hbm %s1181_s8, 128  ;;  %s890_s26 = scalar_lea.hbm %s1230_s5, 256 }
 0x260   : > { %p887_p13 = scmp.ne.s32.totalorder %s1181_s8, %s886_s14  ;;  %p891_p4 = scmp.lt.u32.totalorder %s1181_s8, %s1230_s5 }
 0x261   : > { %p892_p7 = scmp.lt.u32.totalorder %s890_s26, %s886_s14  ;;  %p894_p11 = scmp.lt.u32.totalorder %s886_s14, %s1181_s8 }
 0x262   : > { %p888_p6 = pnand %p887_p13, %p1244_p0 }
 0x263   : > { %p893_p8 = por %p892_p7, %p891_p4 }
 0x264   : > { %p889_p10 = pneg %p888_p6 }
 0x265   : > { %p895_p1 = por %p894_p11, %p893_p8 }
 0x267   : > { %p896_p3 = pnand %p895_p1, %p889_p10 }
 0x269   : > { %899 = shalt.err (!%p896_p3)
}
 0x26a   : > { %725 = dma.vmem_to_hbm [thread:$0]  (%p1244_p0), %s1183_s7, 128, %s1181_s8, %s498_s9  }
 0x26b PF: > { %s523_s12 = sand.u32 1, %s930_s18   ;;  %p1245_p5 = scmp.ne.s32.totalorder %s1235_s25, 0 }
 0x26c   : > { %p1246_p9 = scmp.ge.s32.totalorder %s942_s21, 2  ;;  %s524_s13 = scalar_lea.sflag [#allocation4], %s523_s12 }
 0x26e   : > { %p739_p12 = pnand %p1246_p9, %p1245_p5 }
 0x270   : > { %925 = dma.done.wait (!%p739_p12), %s524_s13, 128  }
 0x271   : > { %927 = vsyncadd (!%p739_p12), %s524_s13, 4294967168  ;;  %p19_p2 = scmp.ge.s32.totalorder %s1092_s16, 4   ;;  %s1247_s18 = smov %s934_s19 }
 0x272   : > { %s1248_s19 = smov %s938_s20  ;;  %s1249_s20 = smov %s1101_s27 }
 0x273   : > { %s1250_s21 = smov %s1092_s16  ;;  %21 = sbr.rel (!%p19_p2) target bundleno = 6 (0x6), region = 93 }
 0x27a   :  { %529 = vsyncpa [#allocation3], 1 }
 0x27b   :  { %531 = vsyncpa [#allocation3 + $0x1], 1 }
 0x27c   :  { %532 = vsyncpa [#allocation6], 1 }
 0x27d   :  { %533 = vsyncpa [#allocation4], 1 }
 0x27e   :  { %535 = vsyncpa [#allocation4 + $0x1], 1 }

</bundles_post_ra>
